<compile_context>
chip_gen: v5e
topology: v5e:2x2
jax: 0.10.0
libtpu: 0.0.40
codegen_flags: <defaults>
</compile_context>

<pallas_src>
import numpy as np
import jax
import jax.numpy as jnp
from jax.experimental import pallas as pl
from jax.experimental.pallas import tpu as pltpu

OUT_H = 14
OUT_W = 14
OUT_HW = OUT_H * OUT_W          # 196 valid output lanes
OUT_PAD = 256                   # lane-padded to a multiple of 128


def _bilinear_matrix(in_size, out_size):
    """1-D resize matrix matching F.interpolate(mode='bilinear', align_corners=False)."""
    m = np.zeros((out_size, in_size), dtype=np.float32)
    if in_size == out_size:
        np.fill_diagonal(m, 1.0)
        return m
    scale = in_size / out_size
    for o in range(out_size):
        src = max(scale * (o + 0.5) - 0.5, 0.0)       # PyTorch clamps negatives to 0
        i0 = min(int(np.floor(src)), in_size - 1)
        i1 = min(i0 + 1, in_size - 1)
        l1 = src - i0
        m[o, i0] += 1.0 - l1
        m[o, i1] += l1
    return m


def _num_tensorcores():
    """2 only on v7x (megacore shards the 'parallel' axis); 1 on single-TC v5e/v6e."""
    try:
        kind = jax.devices()[0].device_kind.lower()
        if "v7" in kind:
            return 2
    except Exception:
        pass
    return 1


def _bce_pos_loss_kernel(s_ref, e_ref, kt_ref, out_ref, acc_ref):
    j = pl.program_id(1)                       # streaming/reduction axis ("arbitrary")

    @pl.when(j == 0)
    def _():
        acc_ref[...] = jnp.zeros_like(acc_ref)

    # Bilinear interpolation of the explanation tile to 14x14 (196 lanes, padded
    # to 256): ONE bf16 MXU pass with the precomputed kron(Rh, Rw)^T matrix,
    # accumulated in f32.
    t = jnp.dot(e_ref[...].astype(jnp.bfloat16), kt_ref[...],
                preferred_element_type=jnp.float32)

    # p = sigmoid(relu(x)); stable BCE log terms (2 transcendentals / element).
    # NOTE: r = relu(x) >= 0 guarantees log(p) >= -ln2, so unlike nn.BCELoss we
    # do NOT need the -100 clamp on log(p) — only on log(1-p).  Keep this in
    # mind if the relu is ever removed.
    r = jnp.maximum(s_ref[...].astype(jnp.float32), 0.0)
    log_p = -jnp.log(1.0 + jnp.exp(-r))                # log(sigmoid(r)), in [-ln2, 0]
    log_1mp = jnp.maximum(log_p - r, -100.0)           # log(1 - sigmoid(r)), BCELoss clamp
    # Zero-padded rows / lanes (t == 0, r == 0) contribute exactly ln(2) each;
    # that constant is subtracted once in the wrapper, so no per-step masking.
    acc_ref[...] += -(t * log_p + (1.0 - t) * log_1mp)

    @pl.when(j == pl.num_programs(1) - 1)
    def _():
        # Single cross-lane reduce only in the epilogue (XLU), per core split.
        out_ref[0, 0] = jnp.sum(acc_ref[...])


def bce_positive_loss(samples, explanations, *, max_tile_rows=2048, core_splits=None):
    n, c, h_in, w_in = explanations.shape
    nc = n * c
    hw = h_in * w_in
    n_elem = nc * OUT_HW
    # BCELoss requires sigmoid(relu(samples)) to match the squeezed 14x14 target;
    # .squeeze()/.view_as() are shape-only, so flattening preserves correspondence.
    assert samples.size == n_elem, "samples must have N*C*14*14 elements"

    if core_splits is None:
        core_splits = _num_tensorcores()

    # Keep the streamed tensors in their native dtype (no extra HBM upcast pass);
    # the kernel upcasts on the VPU.
    s2 = samples.reshape(nc, OUT_HW)
    e2 = explanations.reshape(nc, hw)

    # Lane-pad 196 -> 256: aligned DMA segments and a clean N=256 MXU tile.
    s2 = jnp.pad(s2, ((0, 0), (0, OUT_PAD - OUT_HW)))

    # Static separable bilinear-resize matrix (host-side numpy), kron'd so the
    # in-kernel interpolation is a single (hw, 256) matmul.  bf16 weights: the
    # rows are convex combinations, so the rounding error is tiny.
    k = np.kron(_bilinear_matrix(h_in, OUT_H), _bilinear_matrix(w_in, OUT_W))  # (196, hw)
    kt_np = np.zeros((hw, OUT_PAD), dtype=np.float32)
    kt_np[:, :OUT_HW] = k.T
    kt = jnp.asarray(kt_np, dtype=jnp.bfloat16)

    # Tile sizing: big lane-dense blocks (~4 MiB explanation block per buffer),
    # total VMEM footprint ~10 MiB at hw=256 — inside every generation's scoped
    # default (v5e 16 MiB, v6e/v7x 32 MiB), so no vmem_limit override needed.
    bytes_per_row = hw * e2.dtype.itemsize
    budget_rows = max(8, ((4 * 1024 * 1024) // max(bytes_per_row, 1) // 8) * 8)
    rows_per_split = pl.cdiv(nc, core_splits)
    tile_rows = min(max_tile_rows, budget_rows, ((rows_per_split + 7) // 8) * 8)
    steps = pl.cdiv(rows_per_split, tile_rows)
    padded_rows = core_splits * steps * tile_rows
    if padded_rows != nc:                                # pad only the small tail
        s2 = jnp.pad(s2, ((0, padded_rows - nc), (0, 0)))
        e2 = jnp.pad(e2, ((0, padded_rows - nc), (0, 0)))

    # Grid-invariant weights: single-buffer them when large so the double buffer
    # cannot exceed v7x's 64 MiB VMEM.
    # TODO(synk): for explanation maps so large that even one copy of kt does not
    # fit VMEM, switch to separable interpolation (x Rw^T over width, then x Rh^T
    # over height) instead of the resident kron matrix.
    kt_bytes = kt.size * kt.dtype.itemsize
    if 2 * kt_bytes > (16 << 20):
        kt_spec = pl.BlockSpec((hw, OUT_PAD), lambda i, j: (0, 0),
                               pipeline_mode=pl.Buffered(1))
    else:
        kt_spec = pl.BlockSpec((hw, OUT_PAD), lambda i, j: (0, 0))

    partials = pl.pallas_call(
        _bce_pos_loss_kernel,
        out_shape=jax.ShapeDtypeStruct((core_splits, 1), jnp.float32),
        grid_spec=pltpu.PrefetchScalarGridSpec(
            num_scalar_prefetch=0,
            grid=(core_splits, steps),
            in_specs=[
                pl.BlockSpec((tile_rows, OUT_PAD), lambda i, j: (i * steps + j, 0)),
                pl.BlockSpec((tile_rows, hw), lambda i, j: (i * steps + j, 0)),
                kt_spec,                                   # resident weights
            ],
            out_specs=pl.BlockSpec((1, 1), lambda i, j: (i, 0),
                                   memory_space=pltpu.SMEM),
            # NOTE (v5e): if bundle dumps ever show the single vst slot binding,
            # fold this accumulator to (8, OUT_PAD) with a sublane-sum per step.
            scratch_shapes=[pltpu.VMEM((tile_rows, OUT_PAD), jnp.float32)],
        ),
        compiler_params=pltpu.CompilerParams(
            dimension_semantics=("parallel", "arbitrary")),
    )(s2, e2, kt)

    # Scalar glue: combine per-core partial sums, subtract the exact padded
    # contribution (every zero-padded row/lane element is ln 2), take the mean.
    n_pad_elems = padded_rows * OUT_PAD - n_elem
    total = jnp.sum(partials) - jnp.float32(n_pad_elems) * jnp.float32(np.log(2.0))
    return total / jnp.float32(n_elem)


def bce_positive_loss_ref(samples, explanations):
    """Pure-JAX reference mirroring the PyTorch forward (literal log form + clamp)."""
    n, c, h_in, w_in = explanations.shape
    rh = jnp.asarray(_bilinear_matrix(h_in, OUT_H))
    rw = jnp.asarray(_bilinear_matrix(w_in, OUT_W))
    t = jnp.einsum('oh,nchw,pw->ncop', rh, explanations.astype(jnp.float32), rw,
                   precision=jax.lax.Precision.HIGHEST)
    p = jax.nn.sigmoid(jnp.maximum(samples.astype(jnp.float32), 0.0)).reshape(t.shape)
    log_p = jnp.maximum(jnp.log(p), -100.0)
    log_1mp = jnp.maximum(jnp.log(1.0 - p), -100.0)
    return jnp.mean(-(t * log_p + (1.0 - t) * log_1mp))


if __name__ == "__main__":
    # NOTE: nn.BCELoss in __init__ has no parameters; forward is parameter-free.
    key = jax.random.PRNGKey(0)
    k1, k2 = jax.random.split(key)
    N, C = 2, 4
    # samples are logits at the 14x14 target resolution (required by BCELoss
    # shape matching in the original module); 16x16 explanations get bilinearly
    # resized to 14x14 inside the kernel.
    samples = jax.random.normal(k1, (N, C, OUT_H, OUT_W), dtype=jnp.float32)
    explanations = jax.random.uniform(k2, (N, C, 16, 16), dtype=jnp.float32)

    out = bce_positive_loss(samples, explanations)
    out = jax.block_until_ready(out)

    ref = bce_positive_loss_ref(samples, explanations)
    # The kernel's interpolation is a single bf16 MXU pass vs. the HIGHEST-precision
    # f32 reference; the loss is a mean so absolute error stays ~1e-4 — use a
    # correspondingly loose tolerance.
    assert jnp.allclose(out, ref, rtol=1e-2, atol=1e-3), (out, ref)

    print("KERNEL_OK")
</pallas_src>

<mosaic_0001>
module attributes {stable_mosaic.version = 11 : i64} {
  func.func @_bce_pos_loss_kernel(%arg0: i32, %arg1: i32, %arg2: memref<8x256xf32, #tpu.memory_space<vmem>>, %arg3: memref<8x256xf32, #tpu.memory_space<vmem>>, %arg4: memref<256x256xbf16, #tpu.memory_space<vmem>>, %arg5: memref<1x1xf32, #tpu.memory_space<smem>>, %arg6: memref<8x256xf32, #tpu.memory_space<vmem>>) attributes {dimension_semantics = [#tpu.dimension_semantics<parallel>, #tpu.dimension_semantics<arbitrary>], iteration_bounds = array<i64: 1, 1>, scalar_prefetch = 0 : i64, scratch_operands = 1 : i64, tpu.core_type = #tpu.core_type<tc>, window_params = [{transform_indices = @transform_0, window_bounds = array<i64: 8, 256>}, {transform_indices = @transform_1, window_bounds = array<i64: 8, 256>}, {pipeline_mode = #tpu.pipeline_mode<synchronous>, transform_indices = @transform_2, window_bounds = array<i64: 256, 256>}, {transform_indices = @transform_3, window_bounds = array<i64: 1, 1>}]} {
    %c0_i32 = arith.constant 0 : i32
    %0 = arith.cmpi eq, %arg1, %c0_i32 : i32
    %1 = arith.extui %0 : i1 to i32
    %c0_i32_0 = arith.constant 0 : i32
    %2 = arith.cmpi ne, %1, %c0_i32_0 : i32
    scf.if %2 {
      %cst_19 = arith.constant 0.000000e+00 : f32
      %34 = vector.broadcast %cst_19 : f32 to vector<8x256xf32>
      %c0_20 = arith.constant 0 : index
      %c0_21 = arith.constant 0 : index
      %35 = vector.load %arg6[%c0_20, %c0_21] : memref<8x256xf32, #tpu.memory_space<vmem>>, vector<8x256xf32>
      tpu.vector_store %arg6[%c0_20, %c0_21], %34 {strides = array<i32>} : memref<8x256xf32, #tpu.memory_space<vmem>>, vector<8x256xf32>,
    } else {
    }
    %c0 = arith.constant 0 : index
    %c0_1 = arith.constant 0 : index
    %3 = vector.load %arg3[%c0, %c0_1] : memref<8x256xf32, #tpu.memory_space<vmem>>, vector<8x256xf32>
    %4 = arith.truncf %3 : vector<8x256xf32> to vector<8x256xbf16>
    %c0_2 = arith.constant 0 : index
    %c0_3 = arith.constant 0 : index
    %5 = vector.load %arg4[%c0_2, %c0_3] : memref<256x256xbf16, #tpu.memory_space<vmem>>, vector<256x256xbf16>
    %cst = arith.constant dense<0.000000e+00> : vector<8x256xf32>
    %6 = tpu.matmul %4, %5, %cst {dimension_numbers = #tpu.dot_dimension_numbers<[1], [0], [0], [1], [0, 0, 1, 1], [], []>} : vector<8x256xbf16>, vector<256x256xbf16>, vector<8x256xf32> -> vector<8x256xf32>
    %c0_4 = arith.constant 0 : index
    %c0_5 = arith.constant 0 : index
    %7 = vector.load %arg2[%c0_4, %c0_5] : memref<8x256xf32, #tpu.memory_space<vmem>>, vector<8x256xf32>
    %cst_6 = arith.constant 0.000000e+00 : f32
    %8 = vector.broadcast %cst_6 : f32 to vector<8x256xf32>
    %9 = arith.maximumf %7, %8 : vector<8x256xf32>
    %cst_7 = arith.constant 0.000000e+00 : f32
    %10 = vector.broadcast %cst_7 : f32 to vector<8x256xf32>
    %11 = arith.subf %10, %9 : vector<8x256xf32>
    %12 = math.exp %11 : vector<8x256xf32>
    %cst_8 = arith.constant 1.000000e+00 : f32
    %13 = vector.broadcast %cst_8 : f32 to vector<8x256xf32>
    %14 = arith.addf %13, %12 : vector<8x256xf32>
    %15 = math.log %14 : vector<8x256xf32>
    %cst_9 = arith.constant 0.000000e+00 : f32
    %16 = vector.broadcast %cst_9 : f32 to vector<8x256xf32>
    %17 = arith.subf %16, %15 : vector<8x256xf32>
    %18 = arith.subf %17, %9 : vector<8x256xf32>
    %cst_10 = arith.constant -1.000000e+02 : f32
    %19 = vector.broadcast %cst_10 : f32 to vector<8x256xf32>
    %20 = arith.maximumf %18, %19 : vector<8x256xf32>
    %c0_11 = arith.constant 0 : index
    %c0_12 = arith.constant 0 : index
    %21 = vector.load %arg6[%c0_11, %c0_12] : memref<8x256xf32, #tpu.memory_space<vmem>>, vector<8x256xf32>
    %22 = arith.mulf %6, %17 : vector<8x256xf32>
    %cst_13 = arith.constant 1.000000e+00 : f32
    %23 = vector.broadcast %cst_13 : f32 to vector<8x256xf32>
    %24 = arith.subf %23, %6 : vector<8x256xf32>
    %25 = arith.mulf %24, %20 : vector<8x256xf32>
    %26 = arith.addf %22, %25 : vector<8x256xf32>
    %cst_14 = arith.constant 0.000000e+00 : f32
    %27 = vector.broadcast %cst_14 : f32 to vector<8x256xf32>
    %28 = arith.subf %27, %26 : vector<8x256xf32>
    %29 = arith.addf %21, %28 : vector<8x256xf32>
    %c0_15 = arith.constant 0 : index
    %c0_16 = arith.constant 0 : index
    %30 = vector.load %arg6[%c0_15, %c0_16] : memref<8x256xf32, #tpu.memory_space<vmem>>, vector<8x256xf32>
    tpu.vector_store %arg6[%c0_15, %c0_16], %29 {strides = array<i32>} : memref<8x256xf32, #tpu.memory_space<vmem>>, vector<8x256xf32>,
    %c0_i32_17 = arith.constant 0 : i32
    %31 = arith.cmpi eq, %arg1, %c0_i32_17 : i32
    %32 = arith.extui %31 : i1 to i32
    %c0_i32_18 = arith.constant 0 : i32
    %33 = arith.cmpi ne, %32, %c0_i32_18 : i32
    scf.if %33 {
      %c0_19 = arith.constant 0 : index
      %c0_20 = arith.constant 0 : index
      %34 = vector.load %arg6[%c0_19, %c0_20] : memref<8x256xf32, #tpu.memory_space<vmem>>, vector<8x256xf32>
      %35 = vector.shape_cast %34 : vector<8x256xf32> to vector<1x8x256xf32>
      %cst_21 = arith.constant dense<0.000000e+00> : vector<1xf32>
      %36 = vector.multi_reduction <add>, %35, %cst_21 [1, 2] : vector<1x8x256xf32> to vector<1xf32>
      %37 = vector.shape_cast %36 : vector<1xf32> to vector<1x1x1xf32>
      %38 = vector.extract %37[0, 0, 0] : f32 from vector<1x1x1xf32>
      %c0_22 = arith.constant 0 : index
      %c0_23 = arith.constant 0 : index
      %39 = memref.load %arg5[%c0_22, %c0_23] : memref<1x1xf32, #tpu.memory_space<smem>>
      memref.store %38, %arg5[%c0_22, %c0_23] : memref<1x1xf32, #tpu.memory_space<smem>>
    } else {
    }
    return
  }
  func.func @transform_0(%arg0: i32, %arg1: i32) -> (i32, i32) {
    %c1_i32 = arith.constant 1 : i32
    %0 = arith.muli %arg0, %c1_i32 : i32
    %1 = arith.addi %0, %arg1 : i32
    %c0_i32 = arith.constant 0 : i32
    %c0_i32_0 = arith.constant 0 : i32
    return %1, %c0_i32 : i32, i32
  }
  func.func @transform_1(%arg0: i32, %arg1: i32) -> (i32, i32) {
    %c1_i32 = arith.constant 1 : i32
    %0 = arith.muli %arg0, %c1_i32 : i32
    %1 = arith.addi %0, %arg1 : i32
    %c0_i32 = arith.constant 0 : i32
    %c0_i32_0 = arith.constant 0 : i32
    return %1, %c0_i32 : i32, i32
  }
  func.func @transform_2(%arg0: i32, %arg1: i32) -> (i32, i32) {
    %c0_i32 = arith.constant 0 : i32
    %c0_i32_0 = arith.constant 0 : i32
    %c0_i32_1 = arith.constant 0 : i32
    return %c0_i32, %c0_i32_0 : i32, i32
  }
  func.func @transform_3(%arg0: i32, %arg1: i32) -> (i32, i32) {
    %c0_i32 = arith.constant 0 : i32
    %c0_i32_0 = arith.constant 0 : i32
    return %arg0, %c0_i32 : i32, i32
  }
}

</mosaic_0001>

<bundles_post_ra>
// kernel: tpu_custom_call.1
= control target key start
LH: loop header
LB: loop body
LE: loop exit
PB: predicated region body
PF: predicated region fallthrough
CT: control target
= control target key end

     0   :  { %8 = vsyncpa [#allocation4], 0  ;;  %s698_s0 = inlined_call_operand.hbm [shape: f32[8,256], index: 0, kind: input, shape index: {}]   ;;  %s699_s1 = inlined_call_operand.hbm [shape: f32[8,256], index: 1, kind: input, shape index: {}]   ;;  %s700_s2 = inlined_call_operand.hbm [shape: bf16[256,256], index: 2, kind: input, shape index: {}]   ;;  %s701_s3 = inlined_call_operand.hbm [shape: f32[1,1], index: 3, kind: output, shape index: {}]  }
   0x1   :  { %9 = vsyncpa [#allocation7], 0  ;;  %s35_s14 = sshll.u32 %s699_s1, 4  ;;  %s36_s14 = int_to_ptr.hbm [resolvable:$true] %s35_s14 }
   0x2   :  { %10 = vsyncpa [#allocation5], 0  ;;  %s660_s15 = smov [#allocation6]   ;;  %s20_s19 = sshll.u32 %s698_s0, 4  ;;  %s21_s19 = int_to_ptr.hbm [resolvable:$true] %s20_s19 }
   0x3   :  { %s37_s16 = sshll.u32 %s660_s15, 4  ;;  %s661_s20 = smov [#allocation3]   ;;  %s38_s16 = int_to_ptr.vmem [resolvable:$true] %s37_s16 }
   0x4   :  { %40 = dma.hbm_to_vmem [thread:$0]  %s36_s14, 256, %s38_s16, [#allocation7]  }
   0x5   :  { %s22_s21 = sshll.u32 %s661_s20, 4  ;;  %s45_s24 = sshll.u32 %s700_s2, 4  ;;  %s23_s21 = int_to_ptr.vmem [resolvable:$true] %s22_s21  ;;  %s46_s24 = int_to_ptr.hbm [resolvable:$true] %s45_s24 }
   0x6   :  { %25 = dma.hbm_to_vmem [thread:$0]  %s21_s19, 256, %s23_s21, [#allocation4]  }
   0x7   :  { %s662_s1 = smov [#allocation8]   ;;  %s663_s26 = smov 128  }
   0x8   :  { %s47_s25 = sshll.u32 %s662_s1, 4  ;;  %s664_s27 = smov 8   ;;  %s48_s25 = int_to_ptr.vmem [resolvable:$true] %s47_s25 }
   0x9   :  { %53 = dma.hbm_to_vmem [thread:$0]  %s46_s24, 4096, %s48_s25, [#allocation7], %s663_s26, %s663_s26, %s664_s27  }
   0xa   :  { %654 = dma.done.wait [#allocation4], 256  }
   0xb   :  { %655 = vsyncadd [#allocation4], 4294967040 }
   0xc   :  { %656 = dma.done.wait [#allocation7], 4352  }
   0xd   :  { %657 = vsyncadd [#allocation7], 4294962944  ;;  %v452_v0 = vld [vmem:[#allocation8 + $0x70] sm:$0xf]  ;;  %v537_v1 = vld [vmem:[#allocation8 + $0x74] sm:$0xf0] }
   0xe   :  { %v516_v2 = vld [vmem:[#allocation8 + $0xf0] sm:$0xf]  ;;  %v453_v3 = vor.u32 %v537_v1, %v452_v0  ;;  %v553_v4 = vld [vmem:[#allocation8 + $0xf4] sm:$0xf0]  ;;  %v536_v5 = vld [vmem:[#allocation8 + $0x74] sm:$0xf] }
   0xf   :  { %v454_v6 = vld [vmem:[#allocation8 + $0x78] sm:$0xf0]  ;;  %v517_v7 = vor.u32 %v553_v4, %v516_v2  ;;  %v552_v9 = vld [vmem:[#allocation8 + $0xf4] sm:$0xf]  ;;  %v444_v11 = vld [vmem:[#allocation8 + $0x60] sm:$0xf] }
  0x10   :  { %v457_v8 = vor.u32 %v536_v5, %v454_v6  ;;  %v518_v10 = vld [vmem:[#allocation8 + $0xf8] sm:$0xf0]  ;;  %270 = vmatpush.bf16.msra.mxu0 %v453_v3  ;;  %v535_v13 = vld [vmem:[#allocation8 + $0x64] sm:$0xf0]  ;;  %v508_v14 = vld [vmem:[#allocation8 + $0xe0] sm:$0xf] }
  0x11   :  { %v521_v12 = vor.u32 %v552_v9, %v518_v10  ;;  %v551_v15 = vld [vmem:[#allocation8 + $0xe4] sm:$0xf0]  ;;  %283 = vmatpush.bf16.msra.mxu1 %v517_v7  ;;  %v445_v16 = vor.u32 %v535_v13, %v444_v11  ;;  %v534_v18 = vld [vmem:[#allocation8 + $0x64] sm:$0xf]  ;;  %v446_v19 = vld [vmem:[#allocation8 + $0x68] sm:$0xf0] }
  0x12   :  { %296 = vmatpush.bf16.msra.mxu2 %v457_v8  ;;  %v509_v17 = vor.u32 %v551_v15, %v508_v14  ;;  %v550_v20 = vld [vmem:[#allocation8 + $0xe4] sm:$0xf]  ;;  %v449_v21 = vor.u32 %v534_v18, %v446_v19  ;;  %v510_v22 = vld [vmem:[#allocation8 + $0xe8] sm:$0xf0]  ;;  %v436_v23 = vld [vmem:[#allocation8 + $0x50] sm:$0xf] }
  0x13   :  { %309 = vmatpush.bf16.msra.mxu3 %v521_v12  ;;  %v533_v24 = vld [vmem:[#allocation8 + $0x54] sm:$0xf0]  ;;  %v513_v25 = vor.u32 %v550_v20, %v510_v22  ;;  %v500_v26 = vld [vmem:[#allocation8 + $0xd0] sm:$0xf]  ;;  %v532_v28 = vld [vmem:[#allocation8 + $0x54] sm:$0xf] }
  0x14   :  { %v549_v27 = vld [vmem:[#allocation8 + $0xd4] sm:$0xf0]  ;;  %271 = vmatpush.bf16.msra.mxu0 %v445_v16  ;;  %v437_v29 = vor.u32 %v533_v24, %v436_v23  ;;  %v438_v30 = vld [vmem:[#allocation8 + $0x58] sm:$0xf0]  ;;  %v548_v31 = vld [vmem:[#allocation8 + $0xd4] sm:$0xf] }
  0x15   :  { %v502_v32 = vld [vmem:[#allocation8 + $0xd8] sm:$0xf0]  ;;  %284 = vmatpush.bf16.msra.mxu1 %v509_v17  ;;  %v501_v33 = vor.u32 %v549_v27, %v500_v26  ;;  %v441_v34 = vor.u32 %v532_v28, %v438_v30  ;;  %v428_v35 = vld [vmem:[#allocation8 + $0x40] sm:$0xf]  ;;  %v531_v36 = vld [vmem:[#allocation8 + $0x44] sm:$0xf0] }
  0x16   :  { %297 = vmatpush.bf16.msra.mxu2 %v449_v21  ;;  %v492_v37 = vld [vmem:[#allocation8 + $0xc0] sm:$0xf]  ;;  %v505_v38 = vor.u32 %v548_v31, %v502_v32  ;;  %v547_v39 = vld [vmem:[#allocation8 + $0xc4] sm:$0xf0]  ;;  %v530_v40 = vld [vmem:[#allocation8 + $0x44] sm:$0xf]  ;;  %v429_v44 = vor.u32 %v531_v36, %v428_v35 }
  0x17   :  { %310 = vmatpush.bf16.msra.mxu3 %v513_v25  ;;  %v430_v41 = vld [vmem:[#allocation8 + $0x48] sm:$0xf0]  ;;  %v546_v42 = vld [vmem:[#allocation8 + $0xc4] sm:$0xf]  ;;  %v493_v45 = vor.u32 %v547_v39, %v492_v37  ;;  %v420_v47 = vld [vmem:[#allocation8 + $0x30] sm:$0xf] }
  0x18   :  { %v494_v43 = vld [vmem:[#allocation8 + $0xc8] sm:$0xf0]  ;;  %272 = vmatpush.bf16.msra.mxu0 %v437_v29  ;;  %v433_v46 = vor.u32 %v530_v40, %v430_v41  ;;  %v529_v48 = vld [vmem:[#allocation8 + $0x34] sm:$0xf0]  ;;  %v484_v49 = vld [vmem:[#allocation8 + $0xb0] sm:$0xf] }
  0x19   :  { %285 = vmatpush.bf16.msra.mxu1 %v501_v33  ;;  %v497_v50 = vor.u32 %v546_v42, %v494_v43  ;;  %v545_v51 = vld [vmem:[#allocation8 + $0xb4] sm:$0xf0]  ;;  %v528_v52 = vld [vmem:[#allocation8 + $0x34] sm:$0xf]  ;;  %v422_v53 = vld [vmem:[#allocation8 + $0x38] sm:$0xf0]  ;;  %v421_v56 = vor.u32 %v529_v48, %v420_v47 }
  0x1a   :  { %298 = vmatpush.bf16.msra.mxu2 %v441_v34  ;;  %v544_v54 = vld [vmem:[#allocation8 + $0xb4] sm:$0xf]  ;;  %v486_v55 = vld [vmem:[#allocation8 + $0xb8] sm:$0xf0]  ;;  %v485_v57 = vor.u32 %v545_v51, %v484_v49  ;;  %v425_v58 = vor.u32 %v528_v52, %v422_v53  ;;  %v412_v59 = vld [vmem:[#allocation8 + $0x20] sm:$0xf] }
  0x1b   :  { %311 = vmatpush.bf16.msra.mxu3 %v505_v38  ;;  %v527_v60 = vld [vmem:[#allocation8 + $0x24] sm:$0xf0]  ;;  %v476_v61 = vld [vmem:[#allocation8 + $0xa0] sm:$0xf]  ;;  %v489_v62 = vor.u32 %v544_v54, %v486_v55  ;;  %v526_v0 = vld [vmem:[#allocation8 + $0x24] sm:$0xf] }
  0x1c   :  { %273 = vmatpush.bf16.msra.mxu0 %v429_v44  ;;  %v543_v63 = vld [vmem:[#allocation8 + $0xa4] sm:$0xf0]  ;;  %v414_v1 = vld [vmem:[#allocation8 + $0x28] sm:$0xf0]  ;;  %v542_v2 = vld [vmem:[#allocation8 + $0xa4] sm:$0xf]  ;;  %v413_v4 = vor.u32 %v527_v60, %v412_v59 }
  0x1d   :  { %286 = vmatpush.bf16.msra.mxu1 %v493_v45  ;;  %v478_v3 = vld [vmem:[#allocation8 + $0xa8] sm:$0xf0]  ;;  %v477_v5 = vor.u32 %v543_v63, %v476_v61  ;;  %v417_v6 = vor.u32 %v526_v0, %v414_v1  ;;  %v404_v7 = vld [vmem:[#allocation8 + $0x10] sm:$0xf]  ;;  %v525_v8 = vld [vmem:[#allocation8 + $0x14] sm:$0xf0] }
  0x1e   :  { %299 = vmatpush.bf16.msra.mxu2 %v433_v46  ;;  %v468_v9 = vld [vmem:[#allocation8 + $0x90] sm:$0xf]  ;;  %v481_v10 = vor.u32 %v542_v2, %v478_v3  ;;  %v541_v11 = vld [vmem:[#allocation8 + $0x94] sm:$0xf0]  ;;  %v524_v12 = vld [vmem:[#allocation8 + $0x14] sm:$0xf]  ;;  %v405_v16 = vor.u32 %v525_v8, %v404_v7 }
  0x1f   :  { %312 = vmatpush.bf16.msra.mxu3 %v497_v50  ;;  %v406_v13 = vld [vmem:[#allocation8 + $0x18] sm:$0xf0]  ;;  %v540_v14 = vld [vmem:[#allocation8 + $0x94] sm:$0xf]  ;;  %v469_v17 = vor.u32 %v541_v11, %v468_v9  ;;  %v396_v19 = vld [vmem:[#allocation8] sm:$0xf] }
  0x20   :  { %274 = vmatpush.bf16.msra.mxu0 %v421_v56  ;;  %v470_v15 = vld [vmem:[#allocation8 + $0x98] sm:$0xf0]  ;;  %v409_v18 = vor.u32 %v524_v12, %v406_v13  ;;  %v523_v20 = vld [vmem:[#allocation8 + $0x4] sm:$0xf0]  ;;  %v460_v21 = vld [vmem:[#allocation8 + $0x80] sm:$0xf] }
  0x21   :  { %287 = vmatpush.bf16.msra.mxu1 %v485_v57  ;;  %v473_v22 = vor.u32 %v540_v14, %v470_v15  ;;  %v539_v23 = vld [vmem:[#allocation8 + $0x84] sm:$0xf0]  ;;  %v522_v24 = vld [vmem:[#allocation8 + $0x4] sm:$0xf]  ;;  %v398_v25 = vld [vmem:[#allocation8 + $0x8] sm:$0xf0]  ;;  %v397_v28 = vor.u32 %v523_v20, %v396_v19 }
  0x22   :  { %300 = vmatpush.bf16.msra.mxu2 %v425_v58  ;;  %v538_v26 = vld [vmem:[#allocation8 + $0x84] sm:$0xf]  ;;  %v462_v27 = vld [vmem:[#allocation8 + $0x88] sm:$0xf0]  ;;  %v74_v29 = vld [vmem:[#allocation6] sm:$0xff]  ;;  %v461_v30 = vor.u32 %v539_v23, %v460_v21  ;;  %v401_v31 = vor.u32 %v522_v24, %v398_v25  ;;  %s382_s28 = sshll.u32 %s701_s3, 4  ;;  %s383_s28 = int_to_ptr.hbm [resolvable:$true] %s382_s28 }
  0x23   :  { %313 = vmatpush.bf16.msra.mxu3 %v489_v62  ;;  %v75_v32 = vld [vmem:[#allocation6 + $0x8] sm:$0xff]  ;;  %v465_v33 = vor.u32 %v538_v26, %v462_v27  ;;  %v76_v34 = vpack.c.bf16 %v74_v29, %v74_v29  ;;  %v322_v36 = vld [vmem:[#allocation3] sm:$0xff]  ;;  %v323_v38 = vld [vmem:[#allocation3 + $0x8] sm:$0xff]  ;;  %s665_s30 = smov [#allocation9]  }
  0x24   :  { %275 = vmatpush.bf16.msra.mxu0 %v413_v4  ;;  %v77_v35 = vpack.c.bf16 %v75_v32, %v75_v32  ;;  %v324_v37 = vmax.f32 %v322_v36, 0.0  ;;  %v325_v40 = vmax.f32 %v323_v38, 0.0 }
  0x25   :  { %288 = vmatpush.bf16.msra.mxu1 %v477_v5 }
  0x26   :  { %301 = vmatpush.bf16.msra.mxu2 %v417_v6  ;;  %v326_v39 = vsub.f32 0.0, %v324_v37  ;;  %v327_v42 = vsub.f32 0.0, %v325_v40 }
  0x27   :  { %314 = vmatpush.bf16.msra.mxu3 %v481_v10 }
  0x28   :  { %276 = vmatpush.bf16.msra.mxu0 %v405_v16  ;;  %v328_v41 = vmul.f32 1.442695, %v326_v39  ;;  %v330_v43 = vmul.f32 1.442695, %v327_v42 }
  0x29   :  { %289 = vmatpush.bf16.msra.mxu1 %v469_v17 }
  0x2a   :  { %302 = vmatpush.bf16.msra.mxu2 %v409_v18  ;;  %562 = vpow2.f32 %v328_v41 }
  0x2b   :  { %315 = vmatpush.bf16.msra.mxu3 %v473_v22  ;;  %564 = vpow2.f32 %v330_v43 }
  0x2c   :  { %277 = vmatpush.bf16.msra.mxu0 %v397_v28 }
  0x2d   :  { %290 = vmatpush.bf16.msra.mxu1 %v461_v30 }
  0x2e   :  { %303 = vmatpush.bf16.msra.mxu2 %v401_v31 }
  0x2f   :  { %316 = vmatpush.bf16.msra.mxu3 %v465_v33  ;;  %278 = vmatmul.bf16.vlgmr.msra.gmra.mxu0 %v76_v34 }
  0x30   :  { %291 = vmatmul.bf16.vlgmr.msra.gmra.mxu1 %v77_v35  ;;  %v563_v44 = vpop.eup %562 }
  0x31   :  { %304 = vmatmul.bf16.vlgmr.msra.gmra.mxu2 %v76_v34  ;;  %v332_v45 = vadd.f32 1.0, %v563_v44  ;;  %v565_v46 = vpop.eup %564 }
  0x32   :  { %317 = vmatmul.bf16.vlgmr.msra.gmra.mxu3 %v77_v35  ;;  %v333_v47 = vadd.f32 1.0, %v565_v46 }
  0x33   :  { %566 = vlog2.f32 %v332_v45 }
  0x34   :  { %568 = vlog2.f32 %v333_v47 }
  0x39   :  { %v567_v48 = vpop.eup %566 }
  0x3a   :  { %v335_v49 = vmul.f32 0.6931472, %v567_v48  ;;  %v569_v50 = vpop.eup %568 }
  0x3b   :  { %v337_v52 = vmul.f32 0.6931472, %v569_v50 }
  0x3c   :  { %v338_v51 = vsub.f32 0.0, %v335_v49 }
  0x3d   :  { %v339_v56 = vsub.f32 0.0, %v337_v52 }
  0x3e   :  { %v340_v55 = vsub.f32 %v338_v51, %v324_v37 }
  0x3f   :  { %v341_v59 = vsub.f32 %v339_v56, %v325_v40 }
  0x40   :  { %v342_v60 = vmax.f32 %v340_v55, -100.0 }
  0x41   :  { %v343_v3 = vmax.f32 %v341_v59, -100.0 }
  0xac   :  { %v279_v53 = vpop.f32.mrf.mxu0 }
  0xad   :  { %v292_v54 = vpop.f32.mrf.mxu1 }
  0xae   :  { %v293_v57 = vadd.f32 %v292_v54, %v279_v53 }
  0xb0   :  { %v348_v58 = vsub.f32 1.0, %v293_v57  ;;  %v346_v0 = vmul.f32 %v338_v51, %v293_v57 }
  0xb2   :  { %v350_v4 = vmul.f32 %v348_v58, %v342_v60 }
  0xb4   :  { %v305_v61 = vpop.f32.mrf.mxu2  ;;  %v281_v63 = vpop.f32.mrf.mxu0  ;;  %v352_v8 = vadd.f32 %v350_v4, %v346_v0 }
  0xb5   :  { %v318_v62 = vpop.f32.mrf.mxu3  ;;  %v294_v2 = vpop.f32.mrf.mxu1 }
  0xb6   :  { %v319_v1 = vadd.f32 %v318_v62, %v305_v61  ;;  %v354_v12 = vsub.f32 0.0, %v352_v8 }
  0xb8   :  { %v349_v5 = vsub.f32 1.0, %v319_v1  ;;  %v347_v6 = vmul.f32 %v339_v56, %v319_v1 }
  0xba   :  { %v351_v7 = vmul.f32 %v349_v5, %v343_v3 }
  0xbc   :  { %v307_v9 = vpop.f32.mrf.mxu2  ;;  %v353_v10 = vadd.f32 %v351_v7, %v347_v6 }
  0xbd   :  { %v320_v11 = vpop.f32.mrf.mxu3 }
  0xbe   :  { %v355_v13 = vsub.f32 0.0, %v353_v10 }
  0xc0   :  { %v365_v14 = vadd.f32 %v355_v13, %v354_v12 }
  0xc2   :  { %366 = vadd.xlane.f32.xlu0 %v365_v14 }
 0x135   :  { %v367_v15 = vpop.xlane.xlu0 %366 }
 0x136   :  { %v368_v16 = vrot.slane %v367_v15, 4 }
 0x138   :  { %v369_v17 = vadd.f32 %v368_v16, %v367_v15 }
 0x13a   :  { %v370_v18 = vrot.slane %v369_v17, 2 }
 0x13c   :  { %v371_v19 = vadd.f32 %v370_v18, %v369_v17 }
 0x13e   :  { %v372_v20 = vrot.slane %v371_v19, 1 }
 0x140   :  { %v373_v21 = vadd.f32 %v372_v20, %v371_v19 }
 0x142   :  { %554 = vpush %v373_v21 }
 0x173   :  { %s555_s29 = spop %554 }
 0x174   :  { %376 = sst [smem:[#allocation9]] %s555_s29 }
 0x175   :  { %385 = dma.smem_to_hbm %s665_s30, 16, %s383_s28, [#allocation5]  }
 0x176   :  { %658 = dma.done.wait [#allocation5], 16  }
 0x177   :  { %659 = vsyncadd [#allocation5], 4294967280 }
 0x178   :  { %390 = sfence }
 0x179   :  { %391 = vsyncpa [#allocation4], 1 }
 0x17a   :  { %392 = vsyncpa [#allocation7], 1 }
 0x17b   :  { %393 = vsyncpa [#allocation5], 1 }

</bundles_post_ra>
